<compile_context>
chip_gen: v7x
topology: tpu7x:2x2x1
jax: 0.10.0
libtpu: 0.0.40
codegen_flags: <defaults>
</compile_context>

<pallas_src>
import numpy as np
import jax
import jax.numpy as jnp
from jax.experimental import pallas as pl
from jax.experimental.pallas import tpu as pltpu


# ----------------------------- Pallas kernel --------------------------------

def _fused_seg_kernel(ph_ref, wb_ref, bb_ref, wc_ref, bc_ref, up_ref, o_ref):
    """Fully fused per-image forward.

    ph_ref : [1, 4*Cin, Hf+1, Wf+1] f32  stride-2 phase decomposition of the
                                         zero-padded input (phase p = 2a+b
                                         holds x_pad[:, a::2, b::2]).
    wb_ref : [9, Cm, Cin]  bf16          conv3x3 weights, tap-major (kh*3+kw).
    bb_ref : [Cm, 1]       f32           conv bias.
    wc_ref : [K, Cm]       bf16          1x1 classifier weights.
    bc_ref : [K, 1]        f32           classifier bias.
    up_ref : [Hf*Wf, H*W]  bf16          Kronecker bilinear-interp matrix.
    o_ref  : [1, K, H*W]   f32           lane-dense output slab.
    """
    cin = ph_ref.shape[1] // 4
    hf = ph_ref.shape[2] - 1
    wf = ph_ref.shape[3] - 1
    cm = wb_ref.shape[1]
    s = hf * wf

    ph = ph_ref[0]                                    # [4*Cin, Hf+1, Wf+1] f32

    # --- backbone conv3x3 (stride 2, pad 1): implicit im2col ----------------
    # Accumulate 9 shifted matmuls; each tap is a contiguous static slice of
    # the stride-phase buffer (no strided VMEM reads, no 9x patch material-
    # ization in HBM).
    feat = jnp.zeros((cm, s), jnp.float32)
    for kh in range(3):
        for kw in range(3):
            p = (kh % 2) * 2 + (kw % 2)               # which stride-2 phase
            r0, c0 = kh // 2, kw // 2                 # offset inside the phase
            tap = ph[p * cin:(p + 1) * cin, r0:r0 + hf, c0:c0 + wf]
            tap = tap.reshape(cin, s).astype(jnp.bfloat16)    # [Cin, Hf*Wf]
            feat += jnp.dot(wb_ref[kh * 3 + kw], tap,
                            preferred_element_type=jnp.float32)
    feat = jnp.maximum(feat + bb_ref[...], 0.0)       # bias + ReLU in f32

    # --- classifier (1x1 conv), spatial axis stays in lanes -----------------
    logits = jnp.dot(wc_ref[...], feat.astype(jnp.bfloat16),
                     preferred_element_type=jnp.float32) + bc_ref[...]

    # --- bilinear upsample (align_corners=False) as one dense matmul --------
    o_ref[0] = jnp.dot(logits.astype(jnp.bfloat16), up_ref[...],
                       preferred_element_type=jnp.float32)    # [K, H*W]


# ------------------------------ wrapper --------------------------------------

def simple_segmentation_forward(x, params):
    """Pallas implementation of SimpleSegmentationModel.forward (NCHW in/out)."""
    N, Cin, H, W = x.shape
    assert H % 2 == 0 and W % 2 == 0
    Cm = params["bb"].shape[0]
    K = params["bc"].shape[0]
    Hf = (H + 2 - 3) // 2 + 1
    Wf = (W + 2 - 3) // 2 + 1

    # Space-to-depth of the zero-padded input: O(input)-byte XLA prep that lets
    # the kernel do implicit im2col with contiguous static VMEM slices.
    xp = jnp.pad(x, ((0, 0), (0, 0), (1, 1), (1, 1)))
    phases = jnp.concatenate(
        [xp[:, :, a::2, b::2] for a in (0, 1) for b in (0, 1)], axis=1)
    # phases: [N, 4*Cin, Hf+1, Wf+1]

    out2d = pl.pallas_call(
        _fused_seg_kernel,
        out_shape=jax.ShapeDtypeStruct((N, K, H * W), jnp.float32),
        grid=(N,),
        in_specs=[
            pl.BlockSpec((1, 4 * Cin, Hf + 1, Wf + 1), lambda n: (n, 0, 0, 0)),
            pl.BlockSpec((9, Cm, Cin), lambda n: (0, 0, 0)),   # weights stay resident
            pl.BlockSpec((Cm, 1), lambda n: (0, 0)),
            pl.BlockSpec((K, Cm), lambda n: (0, 0)),
            pl.BlockSpec((K, 1), lambda n: (0, 0)),
            pl.BlockSpec((Hf * Wf, H * W), lambda n: (0, 0)),
        ],
        out_specs=pl.BlockSpec((1, K, H * W), lambda n: (n, 0, 0)),
        compiler_params=pltpu.CompilerParams(
            dimension_semantics=("parallel",),       # shard batch across TCs (v7x)
            vmem_limit_bytes=32 * 1024 * 1024,       # ample on v5e/v6e/v7x; working set << 1 MiB
        ),
    )(phases, params["wb_taps"], params["bb"], params["wc_mat"],
      params["bc"], params["up_mat"])

    return out2d.reshape(N, K, H, W)                 # pure reshape, no transpose


# --------------------------- parameter packing --------------------------------

def _interp_matrix(out_size, in_size):
    """PyTorch F.interpolate(mode='bilinear', align_corners=False) weights."""
    scale = in_size / out_size
    i = np.arange(out_size)
    src = np.maximum((i + 0.5) * scale - 0.5, 0.0)
    i0 = np.minimum(np.floor(src).astype(np.int64), in_size - 1)
    i1 = np.minimum(i0 + 1, in_size - 1)
    w1 = src - i0
    w0 = 1.0 - w1
    m = np.zeros((out_size, in_size), dtype=np.float32)
    np.add.at(m, (i, i0), w0)
    np.add.at(m, (i, i1), w1)
    return m


def make_params(wb, bb, wc, bc, out_hw):
    """Pack conv weights + the (hoisted) bilinear-interp matrix for the kernel."""
    Cm, Cin, kh, kw = wb.shape
    assert (kh, kw) == (3, 3)
    K = wc.shape[0]
    H, W = out_hw
    Hf = (H + 2 - 3) // 2 + 1
    Wf = (W + 2 - 3) // 2 + 1
    wh = _interp_matrix(H, Hf)                       # [H, Hf]
    ww = _interp_matrix(W, Wf)                       # [W, Wf]
    up = np.kron(wh.T, ww.T)                         # [Hf*Wf, H*W]
    return {
        # tap-major conv weights: wb_taps[kh*3+kw] = wb[:, :, kh, kw]
        "wb_taps": jnp.asarray(wb).transpose(2, 3, 0, 1)
                       .reshape(9, Cm, Cin).astype(jnp.bfloat16),
        "bb": jnp.asarray(bb).reshape(Cm, 1).astype(jnp.float32),
        "wc_mat": jnp.asarray(wc).reshape(K, Cm).astype(jnp.bfloat16),
        "bc": jnp.asarray(bc).reshape(K, 1).astype(jnp.float32),
        # exact in bf16 for scale-2 upsampling (weights are 0/0.25/0.75/1)
        "up_mat": jnp.asarray(up, dtype=jnp.bfloat16),
    }


# ------------------------------ reference ------------------------------------

def _reference_forward(x, wb, bb, wc, bc):
    feat = jax.lax.conv_general_dilated(
        x, wb, window_strides=(2, 2), padding=((1, 1), (1, 1)),
        dimension_numbers=("NCHW", "OIHW", "NCHW"))
    feat = jnp.maximum(feat + bb.reshape(1, -1, 1, 1), 0.0)
    logits = jax.lax.conv_general_dilated(
        feat, wc, window_strides=(1, 1), padding=((0, 0), (0, 0)),
        dimension_numbers=("NCHW", "OIHW", "NCHW"))
    logits = logits + bc.reshape(1, -1, 1, 1)
    n, k = logits.shape[:2]
    h, w = x.shape[-2:]
    return jax.image.resize(logits, (n, k, h, w), method="bilinear")


# -------------------------------- main ----------------------------------------

if __name__ == "__main__":
    N, Cin, H, W = 2, 4, 16, 16
    Cm, K = 8, 6

    key = jax.random.PRNGKey(0)
    kx, k1, k2, k3, k4 = jax.random.split(key, 5)

    x = jax.random.normal(kx, (N, Cin, H, W), jnp.float32)
    wb = jax.random.normal(k1, (Cm, Cin, 3, 3), jnp.float32) * 0.1   # backbone conv
    bb = jax.random.normal(k2, (Cm,), jnp.float32) * 0.1
    wc = jax.random.normal(k3, (K, Cm, 1, 1), jnp.float32) * 0.1     # classifier conv
    bc = jax.random.normal(k4, (K,), jnp.float32) * 0.1

    params = make_params(wb, bb, wc, bc, out_hw=(H, W))

    fwd = jax.jit(simple_segmentation_forward)
    out = jax.block_until_ready(fwd(x, params))

    ref = jax.block_until_ready(_reference_forward(x, wb, bb, wc, bc))
    assert out.shape == (N, K, H, W), out.shape
    assert out.dtype == jnp.float32
    # Tolerance relaxed from the f32 1e-4 check because the MXU matmuls now run
    # with bf16 operands (f32 accumulation); observed error is ~1e-3.
    np.testing.assert_allclose(np.asarray(out), np.asarray(ref),
                               rtol=2e-2, atol=2e-2)

    print("KERNEL_OK")
</pallas_src>

<mosaic_0001>
module attributes {stable_mosaic.version = 11 : i64} {
  func.func @_fused_seg_kernel(%arg0: i32, %arg1: memref<1x16x9x9xf32, #tpu.memory_space<vmem>>, %arg2: memref<9x8x4xbf16, #tpu.memory_space<vmem>>, %arg3: memref<8x1xf32, #tpu.memory_space<vmem>>, %arg4: memref<6x8xbf16, #tpu.memory_space<vmem>>, %arg5: memref<6x1xf32, #tpu.memory_space<vmem>>, %arg6: memref<64x256xbf16, #tpu.memory_space<vmem>>, %arg7: memref<1x6x256xf32, #tpu.memory_space<vmem>>) attributes {dimension_semantics = [#tpu.dimension_semantics<parallel>], iteration_bounds = array<i64: 2>, scalar_prefetch = 0 : i64, scratch_operands = 0 : i64, tpu.core_type = #tpu.core_type<tc>, window_params = [{transform_indices = @transform_0, window_bounds = array<i64: 1, 16, 9, 9>}, {pipeline_mode = #tpu.pipeline_mode<synchronous>, transform_indices = @transform_1, window_bounds = array<i64: 9, 8, 4>}, {pipeline_mode = #tpu.pipeline_mode<synchronous>, transform_indices = @transform_2, window_bounds = array<i64: 8, 1>}, {pipeline_mode = #tpu.pipeline_mode<synchronous>, transform_indices = @transform_3, window_bounds = array<i64: 6, 8>}, {pipeline_mode = #tpu.pipeline_mode<synchronous>, transform_indices = @transform_4, window_bounds = array<i64: 6, 1>}, {pipeline_mode = #tpu.pipeline_mode<synchronous>, transform_indices = @transform_5, window_bounds = array<i64: 64, 256>}, {transform_indices = @transform_6, window_bounds = array<i64: 1, 6, 256>}]} {
    %c0 = arith.constant 0 : index
    %c0_0 = arith.constant 0 : index
    %c0_1 = arith.constant 0 : index
    %c0_2 = arith.constant 0 : index
    %0 = vector.load %arg1[%c0, %c0_0, %c0_1, %c0_2] : memref<1x16x9x9xf32, #tpu.memory_space<vmem>>, vector<1x16x9x9xf32>
    %1 = vector.shape_cast %0 : vector<1x16x9x9xf32> to vector<16x9x9xf32>
    %cst = arith.constant 0.000000e+00 : f32
    %2 = vector.broadcast %cst : f32 to vector<8x64xf32>
    %3 = vector.extract_strided_slice %1 {offsets = [0, 0, 0], sizes = [4, 8, 8], strides = [1, 1, 1]} : vector<16x9x9xf32> to vector<4x8x8xf32>
    %4 = vector.shape_cast %3 : vector<4x8x8xf32> to vector<4x64xf32>
    %5 = arith.truncf %4 : vector<4x64xf32> to vector<4x64xbf16>
    %c0_3 = arith.constant 0 : index
    %c0_4 = arith.constant 0 : index
    %c0_5 = arith.constant 0 : index
    %6 = vector.load %arg2[%c0_3, %c0_4, %c0_5] : memref<9x8x4xbf16, #tpu.memory_space<vmem>>, vector<1x8x4xbf16>
    %7 = vector.shape_cast %6 : vector<1x8x4xbf16> to vector<8x4xbf16>
    %cst_6 = arith.constant dense<0.000000e+00> : vector<8x64xf32>
    %8 = tpu.matmul %7, %5, %cst_6 {dimension_numbers = #tpu.dot_dimension_numbers<[1], [0], [0], [1], [0, 0, 1, 1], [], []>} : vector<8x4xbf16>, vector<4x64xbf16>, vector<8x64xf32> -> vector<8x64xf32>
    %9 = arith.addf %2, %8 : vector<8x64xf32>
    %10 = vector.extract_strided_slice %1 {offsets = [4, 0, 0], sizes = [4, 8, 8], strides = [1, 1, 1]} : vector<16x9x9xf32> to vector<4x8x8xf32>
    %11 = vector.shape_cast %10 : vector<4x8x8xf32> to vector<4x64xf32>
    %12 = arith.truncf %11 : vector<4x64xf32> to vector<4x64xbf16>
    %c1 = arith.constant 1 : index
    %c0_7 = arith.constant 0 : index
    %c0_8 = arith.constant 0 : index
    %13 = vector.load %arg2[%c1, %c0_7, %c0_8] : memref<9x8x4xbf16, #tpu.memory_space<vmem>>, vector<1x8x4xbf16>
    %14 = vector.shape_cast %13 : vector<1x8x4xbf16> to vector<8x4xbf16>
    %cst_9 = arith.constant dense<0.000000e+00> : vector<8x64xf32>
    %15 = tpu.matmul %14, %12, %cst_9 {dimension_numbers = #tpu.dot_dimension_numbers<[1], [0], [0], [1], [0, 0, 1, 1], [], []>} : vector<8x4xbf16>, vector<4x64xbf16>, vector<8x64xf32> -> vector<8x64xf32>
    %16 = arith.addf %9, %15 : vector<8x64xf32>
    %17 = vector.extract_strided_slice %1 {offsets = [0, 0, 1], sizes = [4, 8, 8], strides = [1, 1, 1]} : vector<16x9x9xf32> to vector<4x8x8xf32>
    %18 = vector.shape_cast %17 : vector<4x8x8xf32> to vector<4x64xf32>
    %19 = arith.truncf %18 : vector<4x64xf32> to vector<4x64xbf16>
    %c2 = arith.constant 2 : index
    %c0_10 = arith.constant 0 : index
    %c0_11 = arith.constant 0 : index
    %20 = vector.load %arg2[%c2, %c0_10, %c0_11] : memref<9x8x4xbf16, #tpu.memory_space<vmem>>, vector<1x8x4xbf16>
    %21 = vector.shape_cast %20 : vector<1x8x4xbf16> to vector<8x4xbf16>
    %cst_12 = arith.constant dense<0.000000e+00> : vector<8x64xf32>
    %22 = tpu.matmul %21, %19, %cst_12 {dimension_numbers = #tpu.dot_dimension_numbers<[1], [0], [0], [1], [0, 0, 1, 1], [], []>} : vector<8x4xbf16>, vector<4x64xbf16>, vector<8x64xf32> -> vector<8x64xf32>
    %23 = arith.addf %16, %22 : vector<8x64xf32>
    %24 = vector.extract_strided_slice %1 {offsets = [8, 0, 0], sizes = [4, 8, 8], strides = [1, 1, 1]} : vector<16x9x9xf32> to vector<4x8x8xf32>
    %25 = vector.shape_cast %24 : vector<4x8x8xf32> to vector<4x64xf32>
    %26 = arith.truncf %25 : vector<4x64xf32> to vector<4x64xbf16>
    %c3 = arith.constant 3 : index
    %c0_13 = arith.constant 0 : index
    %c0_14 = arith.constant 0 : index
    %27 = vector.load %arg2[%c3, %c0_13, %c0_14] : memref<9x8x4xbf16, #tpu.memory_space<vmem>>, vector<1x8x4xbf16>
    %28 = vector.shape_cast %27 : vector<1x8x4xbf16> to vector<8x4xbf16>
    %cst_15 = arith.constant dense<0.000000e+00> : vector<8x64xf32>
    %29 = tpu.matmul %28, %26, %cst_15 {dimension_numbers = #tpu.dot_dimension_numbers<[1], [0], [0], [1], [0, 0, 1, 1], [], []>} : vector<8x4xbf16>, vector<4x64xbf16>, vector<8x64xf32> -> vector<8x64xf32>
    %30 = arith.addf %23, %29 : vector<8x64xf32>
    %31 = vector.extract_strided_slice %1 {offsets = [12, 0, 0], sizes = [4, 8, 8], strides = [1, 1, 1]} : vector<16x9x9xf32> to vector<4x8x8xf32>
    %32 = vector.shape_cast %31 : vector<4x8x8xf32> to vector<4x64xf32>
    %33 = arith.truncf %32 : vector<4x64xf32> to vector<4x64xbf16>
    %c4 = arith.constant 4 : index
    %c0_16 = arith.constant 0 : index
    %c0_17 = arith.constant 0 : index
    %34 = vector.load %arg2[%c4, %c0_16, %c0_17] : memref<9x8x4xbf16, #tpu.memory_space<vmem>>, vector<1x8x4xbf16>
    %35 = vector.shape_cast %34 : vector<1x8x4xbf16> to vector<8x4xbf16>
    %cst_18 = arith.constant dense<0.000000e+00> : vector<8x64xf32>
    %36 = tpu.matmul %35, %33, %cst_18 {dimension_numbers = #tpu.dot_dimension_numbers<[1], [0], [0], [1], [0, 0, 1, 1], [], []>} : vector<8x4xbf16>, vector<4x64xbf16>, vector<8x64xf32> -> vector<8x64xf32>
    %37 = arith.addf %30, %36 : vector<8x64xf32>
    %38 = vector.extract_strided_slice %1 {offsets = [8, 0, 1], sizes = [4, 8, 8], strides = [1, 1, 1]} : vector<16x9x9xf32> to vector<4x8x8xf32>
    %39 = vector.shape_cast %38 : vector<4x8x8xf32> to vector<4x64xf32>
    %40 = arith.truncf %39 : vector<4x64xf32> to vector<4x64xbf16>
    %c5 = arith.constant 5 : index
    %c0_19 = arith.constant 0 : index
    %c0_20 = arith.constant 0 : index
    %41 = vector.load %arg2[%c5, %c0_19, %c0_20] : memref<9x8x4xbf16, #tpu.memory_space<vmem>>, vector<1x8x4xbf16>
    %42 = vector.shape_cast %41 : vector<1x8x4xbf16> to vector<8x4xbf16>
    %cst_21 = arith.constant dense<0.000000e+00> : vector<8x64xf32>
    %43 = tpu.matmul %42, %40, %cst_21 {dimension_numbers = #tpu.dot_dimension_numbers<[1], [0], [0], [1], [0, 0, 1, 1], [], []>} : vector<8x4xbf16>, vector<4x64xbf16>, vector<8x64xf32> -> vector<8x64xf32>
    %44 = arith.addf %37, %43 : vector<8x64xf32>
    %45 = vector.extract_strided_slice %1 {offsets = [0, 1, 0], sizes = [4, 8, 8], strides = [1, 1, 1]} : vector<16x9x9xf32> to vector<4x8x8xf32>
    %46 = vector.shape_cast %45 : vector<4x8x8xf32> to vector<4x64xf32>
    %47 = arith.truncf %46 : vector<4x64xf32> to vector<4x64xbf16>
    %c6 = arith.constant 6 : index
    %c0_22 = arith.constant 0 : index
    %c0_23 = arith.constant 0 : index
    %48 = vector.load %arg2[%c6, %c0_22, %c0_23] : memref<9x8x4xbf16, #tpu.memory_space<vmem>>, vector<1x8x4xbf16>
    %49 = vector.shape_cast %48 : vector<1x8x4xbf16> to vector<8x4xbf16>
    %cst_24 = arith.constant dense<0.000000e+00> : vector<8x64xf32>
    %50 = tpu.matmul %49, %47, %cst_24 {dimension_numbers = #tpu.dot_dimension_numbers<[1], [0], [0], [1], [0, 0, 1, 1], [], []>} : vector<8x4xbf16>, vector<4x64xbf16>, vector<8x64xf32> -> vector<8x64xf32>
    %51 = arith.addf %44, %50 : vector<8x64xf32>
    %52 = vector.extract_strided_slice %1 {offsets = [4, 1, 0], sizes = [4, 8, 8], strides = [1, 1, 1]} : vector<16x9x9xf32> to vector<4x8x8xf32>
    %53 = vector.shape_cast %52 : vector<4x8x8xf32> to vector<4x64xf32>
    %54 = arith.truncf %53 : vector<4x64xf32> to vector<4x64xbf16>
    %c7 = arith.constant 7 : index
    %c0_25 = arith.constant 0 : index
    %c0_26 = arith.constant 0 : index
    %55 = vector.load %arg2[%c7, %c0_25, %c0_26] : memref<9x8x4xbf16, #tpu.memory_space<vmem>>, vector<1x8x4xbf16>
    %56 = vector.shape_cast %55 : vector<1x8x4xbf16> to vector<8x4xbf16>
    %cst_27 = arith.constant dense<0.000000e+00> : vector<8x64xf32>
    %57 = tpu.matmul %56, %54, %cst_27 {dimension_numbers = #tpu.dot_dimension_numbers<[1], [0], [0], [1], [0, 0, 1, 1], [], []>} : vector<8x4xbf16>, vector<4x64xbf16>, vector<8x64xf32> -> vector<8x64xf32>
    %58 = arith.addf %51, %57 : vector<8x64xf32>
    %59 = vector.extract_strided_slice %1 {offsets = [0, 1, 1], sizes = [4, 8, 8], strides = [1, 1, 1]} : vector<16x9x9xf32> to vector<4x8x8xf32>
    %60 = vector.shape_cast %59 : vector<4x8x8xf32> to vector<4x64xf32>
    %61 = arith.truncf %60 : vector<4x64xf32> to vector<4x64xbf16>
    %c8 = arith.constant 8 : index
    %c0_28 = arith.constant 0 : index
    %c0_29 = arith.constant 0 : index
    %62 = vector.load %arg2[%c8, %c0_28, %c0_29] : memref<9x8x4xbf16, #tpu.memory_space<vmem>>, vector<1x8x4xbf16>
    %63 = vector.shape_cast %62 : vector<1x8x4xbf16> to vector<8x4xbf16>
    %cst_30 = arith.constant dense<0.000000e+00> : vector<8x64xf32>
    %64 = tpu.matmul %63, %61, %cst_30 {dimension_numbers = #tpu.dot_dimension_numbers<[1], [0], [0], [1], [0, 0, 1, 1], [], []>} : vector<8x4xbf16>, vector<4x64xbf16>, vector<8x64xf32> -> vector<8x64xf32>
    %65 = arith.addf %58, %64 : vector<8x64xf32>
    %c0_31 = arith.constant 0 : index
    %c0_32 = arith.constant 0 : index
    %66 = vector.load %arg3[%c0_31, %c0_32] : memref<8x1xf32, #tpu.memory_space<vmem>>, vector<8x1xf32>
    %67 = vector.broadcast %66 : vector<8x1xf32> to vector<8x64xf32>
    %68 = arith.addf %65, %67 : vector<8x64xf32>
    %cst_33 = arith.constant 0.000000e+00 : f32
    %69 = vector.broadcast %cst_33 : f32 to vector<8x64xf32>
    %70 = arith.maximumf %68, %69 : vector<8x64xf32>
    %c0_34 = arith.constant 0 : index
    %c0_35 = arith.constant 0 : index
    %71 = vector.load %arg4[%c0_34, %c0_35] : memref<6x8xbf16, #tpu.memory_space<vmem>>, vector<6x8xbf16>
    %72 = arith.truncf %70 : vector<8x64xf32> to vector<8x64xbf16>
    %cst_36 = arith.constant dense<0.000000e+00> : vector<6x64xf32>
    %73 = tpu.matmul %71, %72, %cst_36 {dimension_numbers = #tpu.dot_dimension_numbers<[1], [0], [0], [1], [0, 0, 1, 1], [], []>} : vector<6x8xbf16>, vector<8x64xbf16>, vector<6x64xf32> -> vector<6x64xf32>
    %c0_37 = arith.constant 0 : index
    %c0_38 = arith.constant 0 : index
    %74 = vector.load %arg5[%c0_37, %c0_38] : memref<6x1xf32, #tpu.memory_space<vmem>>, vector<6x1xf32>
    %75 = vector.broadcast %74 : vector<6x1xf32> to vector<6x64xf32>
    %76 = arith.addf %73, %75 : vector<6x64xf32>
    %77 = arith.truncf %76 : vector<6x64xf32> to vector<6x64xbf16>
    %c0_39 = arith.constant 0 : index
    %c0_40 = arith.constant 0 : index
    %78 = vector.load %arg6[%c0_39, %c0_40] : memref<64x256xbf16, #tpu.memory_space<vmem>>, vector<64x256xbf16>
    %cst_41 = arith.constant dense<0.000000e+00> : vector<6x256xf32>
    %79 = tpu.matmul %77, %78, %cst_41 {dimension_numbers = #tpu.dot_dimension_numbers<[1], [0], [0], [1], [0, 0, 1, 1], [], []>} : vector<6x64xbf16>, vector<64x256xbf16>, vector<6x256xf32> -> vector<6x256xf32>
    %c0_42 = arith.constant 0 : index
    %c0_43 = arith.constant 0 : index
    %c0_44 = arith.constant 0 : index
    %80 = vector.load %arg7[%c0_42, %c0_43, %c0_44] : memref<1x6x256xf32, #tpu.memory_space<vmem>>, vector<1x6x256xf32>
    %81 = vector.shape_cast %80 : vector<1x6x256xf32> to vector<6x256xf32>
    %82 = vector.shape_cast %79 : vector<6x256xf32> to vector<1x6x256xf32>
    tpu.vector_store %arg7[%c0_42, %c0_43, %c0_44], %82 {strides = array<i32>} : memref<1x6x256xf32, #tpu.memory_space<vmem>>, vector<1x6x256xf32>,
    return
  }
  func.func @transform_0(%arg0: i32) -> (i32, i32, i32, i32) {
    %c0_i32 = arith.constant 0 : i32
    %c0_i32_0 = arith.constant 0 : i32
    %c0_i32_1 = arith.constant 0 : i32
    %c0_i32_2 = arith.constant 0 : i32
    return %arg0, %c0_i32, %c0_i32_0, %c0_i32_1 : i32, i32, i32, i32
  }
  func.func @transform_1(%arg0: i32) -> (i32, i32, i32) {
    %c0_i32 = arith.constant 0 : i32
    %c0_i32_0 = arith.constant 0 : i32
    %c0_i32_1 = arith.constant 0 : i32
    %c0_i32_2 = arith.constant 0 : i32
    return %c0_i32, %c0_i32_0, %c0_i32_1 : i32, i32, i32
  }
  func.func @transform_2(%arg0: i32) -> (i32, i32) {
    %c0_i32 = arith.constant 0 : i32
    %c0_i32_0 = arith.constant 0 : i32
    %c0_i32_1 = arith.constant 0 : i32
    return %c0_i32, %c0_i32_0 : i32, i32
  }
  func.func @transform_3(%arg0: i32) -> (i32, i32) {
    %c0_i32 = arith.constant 0 : i32
    %c0_i32_0 = arith.constant 0 : i32
    %c0_i32_1 = arith.constant 0 : i32
    return %c0_i32, %c0_i32_0 : i32, i32
  }
  func.func @transform_4(%arg0: i32) -> (i32, i32) {
    %c0_i32 = arith.constant 0 : i32
    %c0_i32_0 = arith.constant 0 : i32
    %c0_i32_1 = arith.constant 0 : i32
    return %c0_i32, %c0_i32_0 : i32, i32
  }
  func.func @transform_5(%arg0: i32) -> (i32, i32) {
    %c0_i32 = arith.constant 0 : i32
    %c0_i32_0 = arith.constant 0 : i32
    %c0_i32_1 = arith.constant 0 : i32
    return %c0_i32, %c0_i32_0 : i32, i32
  }
  func.func @transform_6(%arg0: i32) -> (i32, i32, i32) {
    %c0_i32 = arith.constant 0 : i32
    %c0_i32_0 = arith.constant 0 : i32
    %c0_i32_1 = arith.constant 0 : i32
    return %arg0, %c0_i32, %c0_i32_0 : i32, i32, i32
  }
}

</mosaic_0001>

<bundles_post_ra>
// kernel: simple_segmentation_forward.1
= control target key start
LH: loop header
LB: loop body
LE: loop exit
PB: predicated region body
PF: predicated region fallthrough
CT: control target
= control target key end

     0   :  { %s2309_s21 = smov 0   ;;  %s2905_s0 = inlined_call_operand.vmem [shape: f32[2,16,9,9], index: 0, kind: input, shape index: {}]   ;;  %s2906_s1 = inlined_call_operand.vmem [shape: bf16[9,8,4], index: 1, kind: input, shape index: {}]   ;;  %s2907_s2 = inlined_call_operand.vmem [shape: f32[8,1], index: 2, kind: input, shape index: {}]   ;;  %s2908_s3 = inlined_call_operand.vmem [shape: bf16[6,8], index: 3, kind: input, shape index: {}]   ;;  %s2909_s4 = inlined_call_operand.vmem [shape: f32[6,1], index: 4, kind: input, shape index: {}]   ;;  %s2910_s5 = inlined_call_operand.vmem [shape: bf16[64,256], index: 5, kind: input, shape index: {}]   ;;  %s2911_s6 = inlined_call_operand.vmem [shape: f32[2,6,256], index: 6, kind: output, shape index: {}]  }
   0x1 LB: > { %s1963_s22 = sadd.s32 4294967295, %s2259_s21   ;;  %p1967_p0 = scmp.ge.s32.totalorder %s2259_s21, 1  ;;  %s2259_s21 = sphi %s2309_s21, %s16_s21  }
   0x2   : > { %p212_p1 = scmp.lt.s32.totalorder %s2259_s21, 3 }
   0x4   : > { %p213_p2 = pnand %p1967_p0, %p212_p1 }
   0x5   : > { %p242_p3 = scmp.lt.s32.totalorder (!%p213_p2), %s1963_s22, 1  ;;  %v282_v0 = vlaneseq (!%p213_p2)  ;;  %v2261_v1 = vmov (!%p213_p2), 1983009808   ;;  %v2262_v3 = vmov (!%p213_p2), 0.0   ;;  %v2263_v5 = vmov (!%p213_p2), 1934713408  }
   0x6   : > { %216 = sbr.rel (%p213_p2) target bundleno = 982 (0x3d6), region = 44  ;;  %v280_v2 = vunpack.c.l.s4 (!%p213_p2), %v2261_v1  ;;  %2023 = vmatprep.subr.bf16.mxu1 (!%p213_p2), %v2262_v3  ;;  %2035 = vmatprep.subr.bf16.mxu0 (!%p213_p2), %v2262_v3  ;;  %v312_v6 = vunpack.c.l.s4 (!%p213_p2), %v2263_v5  ;;  %s2264_s27 = smov (!%p213_p2), 127   ;;  %vm1237_vm0 = vcmask (!%p213_p2), 1046528   ;;  %vm2272_vm1 = vmmov (!%p213_p2), 0  }
   0x7   : > { %v283_v4 = vshrl.u32 (!%p213_p2), %v282_v0, 7  ;;  %s2265_s28 = smov (!%p213_p2), 8   ;;  %s2266_s29 = smov (!%p213_p2), 16   ;;  %2025 = vmatprep.mubr.msk.bf16.mxu1 (!%p213_p2), %vm2272_vm1, %v2262_v3  ;;  %2037 = vmatprep.mubr.msk.bf16.mxu0 (!%p213_p2), %vm2272_vm1, %v2262_v3  ;;  %vm373_vm2 = vcmask (!%p213_p2), 64512   ;;  %vm375_vm3 = vcmask (!%p213_p2), 130048   ;;  %vm377_vm4 = vcmask (!%p213_p2), 195584  }
   0x8   : > { %v281_v7 = vunpack.c.0.s8 (!%p213_p2), %v280_v2  ;;  %v313_v8 = vunpack.c.0.s8 (!%p213_p2), %v312_v6  ;;  %s2267_s30 = smov (!%p213_p2), 24   ;;  %s2268_s7 = smov (!%p213_p2), 32   ;;  %vm379_vm5 = vcmask (!%p213_p2), 261120   ;;  %vm381_vm6 = vcmask (!%p213_p2), 326656  }
   0x9   : > { %s2269_s8 = smov (!%p213_p2), 40   ;;  %s2270_s9 = smov (!%p213_p2), 48   ;;  %vm383_vm7 = vcmask (!%p213_p2), 392192   ;;  %vm385_vm8 = vcmask (!%p213_p2), 457728   ;;  %vm499_vm9 = vcmask (!%p213_p2), 1041408   ;;  %vm495_vm10 = vcmask (!%p213_p2), 31744  }
   0xa   : > { %v2327_v9 = vsub.s32 (!%p213_p2), %v281_v7, %v283_v4  ;;  %v2341_v20 = vsub.s32 (!%p213_p2), %v313_v8, %v283_v4  ;;  %s2271_s10 = smov (!%p213_p2), 56   ;;  %vm1768_vm11 = vcmask (!%p213_p2), 1043456   ;;  %vm1861_vm12 = vcmask (!%p213_p2), 523264  }
   0xd   : > { %s2913_s22 = smov (!%p242_p3, %s1963_s22), 1 }
   0xe   : > { %s2001_s23 = sshll.u32 %s2913_s22, 8 }
   0xf   : > { %s2325_s26 = scalar_lea.vmem %s2905_s0, %s2001_s23 }
  0x10   : > { %v257_v10 = vld [vmem:[%s2325_s26 + $0x20] sm:$0xff]  ;;  %v259_v12 = vld [vmem:[%s2325_s26 + $0x30] sm:$0xff]  ;;  %v256_v25 = vld [vmem:[%s2325_s26 + $0x18] sm:$0x1] }
  0x11   : > { %v253_v11 = vld [vmem:[%s2325_s26] sm:$0xff]  ;;  %597 = vrot.lane.b32.xlu1 %v257_v10, %s2264_s27  ;;  %v255_v14 = vld [vmem:[%s2325_s26 + $0x10] sm:$0xff]  ;;  %v254_v26 = vld [vmem:[%s2325_s26 + $0x8] sm:$0x1]  ;;  %v1247_v38 = vrot.slane %v259_v12, 1  ;;  %v1242_v42 = vrot.slane %v256_v25, 1 }
  0x12   : > { %593 = vrot.lane.b32.xlu0 %v253_v11, %s2264_s27  ;;  %v277_v13 = vcombine.low %v253_v11, %v257_v10  ;;  %v270_v15 = vld [vmem:[%s2325_s26 + $0x90] sm:$0xff]  ;;  %v293_v16 = vcombine.low %v255_v14, %v259_v12  ;;  %v2337_v17 = vld [vmem:[%s2325_s26 + $0x80] sm:$0xff]  ;;  %v278_v21 = vcombine.high %v253_v11, %v257_v10  ;;  %v260_v27 = vld [vmem:[%s2325_s26 + $0x38] sm:$0x1]  ;;  %v1238_v31 = vrot.slane %v253_v11, 1 }
  0x13   : > { %v272_v18 = vld [vmem:[%s2325_s26 + $0xb0] sm:$0xff]  ;;  %v271_v19 = vld [vmem:[%s2325_s26 + $0xa0] sm:$0xff]  ;;  %v258_v32 = vld [vmem:[%s2325_s26 + $0x28] sm:$0x1]  ;;  %v294_v35 = vcombine.high %v255_v14, %v259_v12  ;;  %v1241_v37 = vrot.slane %v255_v14, 1  ;;  %v1239_v43 = vrot.slane %v254_v26, 1 }
  0x14   : > { %v285_v22 = vrot.slane %v277_v13, %v2327_v9  ;;  %v774_v23 = vcombine.low %v270_v15, %v272_v18  ;;  %v775_v24 = vcombine.high %v270_v15, %v272_v18  ;;  %v301_v28 = vrot.slane %v293_v16, %v2327_v9  ;;  %v2352_v33 = vld [vmem:[%s2325_s26 + $0x40] sm:$0xff]  ;;  %v2355_v34 = vld [vmem:[%s2325_s26 + $0x50] sm:$0xff] }
  0x15   : > { %v758_v29 = vcombine.low %v2337_v17, %v271_v19  ;;  %v759_v30 = vcombine.high %v2337_v17, %v271_v19  ;;  %599 = vrot.lane.b32.xlu1 %v259_v12, %s2264_s27  ;;  %v2363_v39 = vld [vmem:[%s2325_s26 + $0x60] sm:$0xff]  ;;  %v2366_v40 = vld [vmem:[%s2325_s26 + $0x70] sm:$0xff]  ;;  %v1244_v44 = vrot.slane %v257_v10, 1  ;;  %v1248_v45 = vrot.slane %v260_v27, 1  ;;  %v262_v10 = vld [vmem:[%s2325_s26 + $0x48] sm:$0x1] }
  0x16   : > { %595 = vrot.lane.b32.xlu0 %v255_v14, %s2264_s27  ;;  %v2360_v36 = vrot.slane %v774_v23, %v2327_v9  ;;  %v1245_v46 = vrot.slane %v258_v32, 1  ;;  %v309_v47 = vcombine.low %v285_v22, %v301_v28  ;;  %v389_v48 = vcombine.low %v2352_v33, %v2363_v39  ;;  %v266_v23 = vld [vmem:[%s2325_s26 + $0x68] sm:$0x1] }
  0x17   : > { %v2369_v41 = vrot.slane %v758_v29, %v2327_v9  ;;  %v405_v50 = vcombine.low %v2355_v34, %v2366_v40  ;;  %v2378_v51 = vrot.slane %v278_v21, %v2327_v9  ;;  %v2381_v52 = vrot.slane %v294_v35, %v2327_v9 }
  0x18   : > { %v1243_v53 = vsel %vm1237_vm0, %v1241_v37, %v1242_v42  ;;  %v2388_v54 = vsel %vm1237_vm0, %v1238_v31, %v1239_v43  ;;  %v397_v55 = vrot.slane %v389_v48, %v2327_v9  ;;  %v1249_v57 = vsel %vm1237_vm0, %v1247_v38, %v1248_v45 }
  0x19   : > { %v790_v49 = vcombine.low %v2369_v41, %v2360_v36  ;;  %1070 = vrot.lane.b32.xlu1 %v270_v15, %s2264_s27  ;;  %v413_v56 = vrot.slane %v405_v50, %v2327_v9  ;;  %v2394_v58 = vsel %vm1237_vm0, %v1244_v44, %v1245_v46  ;;  %v2397_v59 = vrot.slane %v309_v47, %v2341_v20 }
  0x1a   : > { %1068 = vrot.lane.b32.xlu0 %v2337_v17, %s2264_s27  ;;  %v310_v60 = vcombine.high %v285_v22, %v301_v28  ;;  %v1270_v61 = vcombine.low %v1243_v53, %v1249_v57  ;;  %v1254_v62 = vcombine.low %v2388_v54, %v2394_v58  ;;  %v2402_v1 = vrot.slane %v775_v24, %v2327_v9  ;;  %v268_v24 = vld [vmem:[%s2325_s26 + $0x78] sm:$0x1] }
  0x1b   : > { %v421_v63 = vcombine.low %v397_v55, %v413_v56  ;;  %v422_v0 = vcombine.high %v397_v55, %v413_v56  ;;  %v325_v4 = vcombine.low %v2378_v51, %v2381_v52  ;;  %v390_v7 = vcombine.high %v2352_v33, %v2363_v39 }
  0x1c   : > { %v324_v2 = vrot.slane %v310_v60, %v2341_v20  ;;  %v406_v8 = vcombine.high %v2355_v34, %v2366_v40  ;;  %v2419_v11 = vrot.slane %v759_v30, %v2327_v9  ;;  %v1271_v12 = vcombine.high %v1243_v53, %v1249_v57 }
  0x1d   : > { %1074 = vrot.lane.b32.xlu1 %v272_v18, %s2264_s27  ;;  %v2410_v5 = vrot.slane %v421_v63, %v2341_v20  ;;  %v436_v6 = vrot.slane %v422_v0, %v2341_v20  ;;  %v341_v13 = vcombine.high %v2397_v59, %v2262_v3  ;;  %v1415_v14 = vrot.slane %v2352_v33, 1 }
  0x1e   : > { %1072 = vrot.lane.b32.xlu0 %v271_v19, %s2264_s27  ;;  %v2425_v15 = vrot.slane %v1270_v61, %v2327_v9  ;;  %v2428_v16 = vrot.slane %v1254_v62, %v2327_v9  ;;  %v404_v18 = vrot.slane %v390_v7, %v2327_v9  ;;  %v264_v19 = vld [vmem:[%s2325_s26 + $0x58] sm:$0x1]  ;;  %v342_v21 = vcombine.high %v324_v2, %v2262_v3 }
  0x1f   : > { %v453_v17 = vcombine.high %v2410_v5, %v2262_v3  ;;  %v420_v22 = vrot.slane %v406_v8, %v2327_v9  ;;  %v1416_v25 = vrot.slane %v262_v10, 1  ;;  %v1418_v26 = vrot.slane %v2355_v34, 1 }
  0x20   : > { %v2109_v27 = vpack.i.bf16 %v324_v2, %v436_v6  ;;  %v454_v28 = vcombine.high %v436_v6, %v2262_v3  ;;  %v333_v29 = vrot.slane %v325_v4, %v2341_v20  ;;  %v326_v30 = vcombine.high %v2378_v51, %v2381_v52 }
  0x21   : > { %1586 = vrot.lane.b32.xlu1 %v1243_v53, %s2264_s27  ;;  %v2104_v31 = vpack.i.bf16 %v341_v13, %v453_v17  ;;  %v437_v32 = vcombine.low %v404_v18, %v420_v22  ;;  %v438_v33 = vcombine.high %v404_v18, %v420_v22  ;;  %v1419_v35 = vrot.slane %v264_v19, 1 }
  0x22   : > { %1584 = vrot.lane.b32.xlu0 %v2388_v54, %s2264_s27  ;;  %v1421_v37 = vrot.slane %v2363_v39, 1  ;;  %v1422_v38 = vrot.slane %v266_v23, 1  ;;  %v1424_v42 = vrot.slane %v2366_v40, 1  ;;  %v1425_v43 = vrot.slane %v268_v24, 1 }
  0x23   : > { %v445_v34 = vrot.slane %v437_v32, %v2341_v20  ;;  %v1417_v44 = vsel %vm1237_vm0, %v1415_v14, %v1416_v25  ;;  %v1420_v45 = vsel %vm1237_vm0, %v1418_v26, %v1419_v35  ;;  %v1255_v46 = vcombine.high %v2388_v54, %v2394_v58 }
  0x24   : > { %v1286_v39 = vcombine.low %v2428_v16, %v2425_v15  ;;  %v1423_v40 = vsel %vm1237_vm0, %v1421_v37, %v1422_v38  ;;  %v1426_v47 = vsel %vm1237_vm0, %v1424_v42, %v1425_v43  ;;  %v1285_v48 = vrot.slane %v1271_v12, %v2327_v9 }
  0x25   : > { %1590 = vrot.lane.b32.xlu1 %v1249_v57, %s2264_s27  ;;  %v2114_v50 = vpack.i.bf16 %v342_v21, %v454_v28  ;;  %v343_v51 = vcombine.high %v333_v29, %v2262_v3  ;;  %v340_v52 = vrot.slane %v326_v30, %v2341_v20  ;;  %v452_v53 = vrot.slane %v438_v33, %v2341_v20 }
  0x26   : > { %1588 = vrot.lane.b32.xlu0 %v2394_v58, %s2264_s27  ;;  %v1431_v55 = vcombine.low %v1417_v44, %v1423_v40  ;;  %v1447_v56 = vcombine.low %v1420_v45, %v1426_v47  ;;  %v1432_v57 = vcombine.high %v1417_v44, %v1423_v40  ;;  %v2119_v54 = vpack.i.bf16 %v333_v29, %v445_v34 }
  0x27   : > { %v455_v58 = vcombine.high %v445_v34, %v2262_v3  ;;  %v1448_v60 = vcombine.high %v1420_v45, %v1426_v47  ;;  %v1269_v61 = vrot.slane %v1255_v46, %v2327_v9  ;;  %v2471_v0 = vrot.slane %v1286_v39, %v2341_v20  ;;  %v273_v47 = vld [vmem:[%s2325_s26 + $0xc0] sm:$0xff] }
  0x28   : > { %v1439_v62 = vrot.slane %v1431_v55, %v2327_v9  ;;  %v1455_v63 = vrot.slane %v1447_v56, %v2327_v9  ;;  %v344_v2 = vcombine.high %v340_v52, %v2262_v3  ;;  %v1287_v4 = vcombine.high %v2428_v16, %v2425_v15 }
  0x29   : > { %2110 = vrot.lane.b32.xlu1 %v2109_v27, %s2266_s29  ;;  %v791_v6 = vcombine.high %v2369_v41, %v2360_v36  ;;  %v806_v7 = vcombine.low %v2419_v11, %v2402_v1  ;;  %v1446_v10 = vrot.slane %v1432_v57, %v2327_v9  ;;  %v1462_v12 = vrot.slane %v1448_v60, %v2327_v9 }
  0x2a   : > { %2105 = vrot.lane.b32.xlu0 %v2104_v31, %s2265_s28  ;;  %v1464_v8 = vcombine.high %v1439_v62, %v1455_v63  ;;  %v1463_v13 = vcombine.low %v1439_v62, %v1455_v63  ;;  %v2124_v14 = vpack.i.bf16 %v343_v51, %v455_v58  ;;  %v2129_v15 = vpack.i.bf16 %v340_v52, %v452_v53  ;;  %v276_v51 = vld [vmem:[%s2325_s26 + $0xf0] sm:$0xff] }
  0x2b   : > { %v456_v16 = vcombine.high %v452_v53, %v2262_v3  ;;  %v1318_v17 = vcombine.high %v2471_v0, %v2262_v3  ;;  %v1301_v19 = vrot.slane %v1287_v4, %v2341_v20  ;;  %v807_v22 = vcombine.high %v2419_v11, %v2402_v1 }
  0x2c   : > { %v2488_v18 = vrot.slane %v1463_v13, %v2341_v20  ;;  %v1478_v21 = vrot.slane %v1464_v8, %v2341_v20  ;;  %v1302_v23 = vcombine.low %v1269_v61, %v1285_v48  ;;  %v1479_v24 = vcombine.low %v1446_v10, %v1462_v12 }
  0x2d   : > { %2120 = vrot.lane.b32.xlu1 %v2119_v54, %s2268_s7  ;;  %v2134_v26 = vpack.i.bf16 %v344_v2, %v456_v16  ;;  %v1319_v27 = vcombine.high %v1301_v19, %v2262_v3  ;;  %v1303_v30 = vcombine.high %v1269_v61, %v1285_v48  ;;  %v1480_v31 = vcombine.high %v1446_v10, %v1462_v12  ;;  %v275_v48 = vld [vmem:[%s2325_s26 + $0xe0] sm:$0xff] }
  0x2e   : > { %2115 = vrot.lane.b32.xlu0 %v2114_v50, %s2267_s30  ;;  %v1495_v25 = vcombine.high %v2488_v18, %v2262_v3  ;;  %v1496_v28 = vcombine.high %v1478_v21, %v2262_v3  ;;  %v2144_v32 = vpack.i.bf16 %v1478_v21, %v1301_v19  ;;  %v1310_v33 = vrot.slane %v1302_v23, %v2341_v20  ;;  %v274_v50 = vld [vmem:[%s2325_s26 + $0xd0] sm:$0xff] }
  0x2f   : > { %v1487_v35 = vrot.slane %v1479_v24, %v2341_v20  ;;  %v2505_v38 = vrot.slane %v1303_v30, %v2341_v20  ;;  %v2508_v42 = vrot.slane %v1480_v31, %v2341_v20  ;;  %v911_v53 = vcombine.low %v273_v47, %v275_v48 }
  0x30   : > { %v2139_v29 = vpack.i.bf16 %v1495_v25, %v1318_v17  ;;  %v2149_v37 = vpack.i.bf16 %v1496_v28, %v1319_v27  ;;  %v2513_v34 = vcombine.high %v1310_v33, %v2262_v3  ;;  %v927_v54 = vcombine.low %v274_v50, %v276_v51 }
  0x31   : > { %2130 = vrot.lane.b32.xlu1 %v2129_v15, %s2270_s9  ;;  %v2214_v43 = vpack.i.bf16 %v2508_v42, %v2505_v38  ;;  %v2516_v44 = vcombine.high %v1487_v35, %v2262_v3  ;;  %v2154_v45 = vpack.i.bf16 %v1487_v35, %v1310_v33  ;;  %v919_v2 = vrot.slane %v911_v53, %v2327_v9 }
  0x32   : > { %2125 = vrot.lane.b32.xlu0 %v2124_v14, %s2269_s8  ;;  %v935_v12 = vrot.slane %v927_v54, %v2327_v9  ;;  %v912_v13 = vcombine.high %v273_v47, %v275_v48  ;;  %v928_v14 = vcombine.high %v274_v50, %v276_v51  ;;  %v805_v17 = vrot.slane %v791_v6, %v2341_v20 }
  0x33   : > { %v2209_v46 = vpack.i.bf16 %v2516_v44, %v2513_v34  ;;  %v2554_v6 = vrot.slane %v806_v7, %v2341_v20 }
  0x34   : > { %v944_v24 = vcombine.high %v919_v2, %v935_v12  ;;  %v926_v25 = vrot.slane %v912_v13, %v2327_v9  ;;  %v943_v47 = vcombine.low %v919_v2, %v935_v12 }
  0x35   : > { %2140 = vrot.lane.b32.xlu1 %v2139_v29, %s2265_s28 }
  0x36   : > { %2135 = vrot.lane.b32.xlu0 %v2134_v26, %s2271_s10  ;;  %v942_v26 = vrot.slane %v928_v14, %v2327_v9  ;;  %v958_v53 = vrot.slane %v944_v24, %v2341_v20  ;;  %v2581_v2 = vrot.slane %v943_v47, %v2341_v20 }
  0x38   : > { %v976_v13 = vcombine.high %v958_v53, %v2262_v3 }
  0x39   : > { %2150 = vrot.lane.b32.xlu1 %v2149_v37, %s2267_s30 }
  0x3a   : > { %2145 = vrot.lane.b32.xlu0 %v2144_v32, %s2266_s29 }
  0x3e   : > { %2155 = vrot.lane.b32.xlu0 %v2154_v45, %s2268_s7 }
  0x83   : > { %v598_v39 = vpop.permute.xlu1 %597 }
  0x84   : > { %v594_v40 = vpop.permute.xlu0 %593 }
  0x85   : > { %v605_v52 = vcombine.low %v594_v40, %v598_v39  ;;  %v606_v55 = vcombine.high %v594_v40, %v598_v39  ;;  %v959_v40 = vcombine.low %v926_v25, %v942_v26 }
  0x87   : > { %v600_v56 = vpop.permute.xlu1 %599  ;;  %v613_v61 = vrot.slane %v605_v52, %v2327_v9  ;;  %v620_v4 = vrot.slane %v606_v55, %v2327_v9 }
  0x88   : > { %v596_v57 = vpop.permute.xlu0 %595 }
  0x89   : > { %v621_v58 = vcombine.low %v596_v57, %v600_v56  ;;  %v622_v60 = vcombine.high %v596_v57, %v600_v56  ;;  %v2575_v57 = vrot.slane %v807_v22, %v2341_v20 }
  0x8b   : > { %v629_v62 = vrot.slane %v621_v58, %v2327_v9  ;;  %v636_v63 = vrot.slane %v622_v60, %v2327_v9  ;;  %v1071_v8 = vpop.permute.xlu1 %1070  ;;  %v967_v60 = vrot.slane %v959_v40, %v2341_v20 }
  0x8c   : > { %v1069_v10 = vpop.permute.xlu0 %1068 }
  0x8d   : > { %v638_v15 = vcombine.high %v613_v61, %v629_v62  ;;  %v653_v16 = vcombine.low %v620_v4, %v636_v63  ;;  %v654_v31 = vcombine.high %v620_v4, %v636_v63  ;;  %v637_v54 = vcombine.low %v613_v61, %v629_v62 }
  0x8e   : > { %v960_v63 = vcombine.high %v926_v25, %v942_v26  ;;  %v2597_v62 = vrot.slane %v790_v49, %v2341_v20 }
  0x8f   : > { %v2542_v19 = vrot.slane %v638_v15, %v2341_v20  ;;  %v1075_v21 = vpop.permute.xlu1 %1074  ;;  %v2548_v33 = vrot.slane %v653_v16, %v2341_v20  ;;  %v2569_v56 = vrot.slane %v654_v31, %v2341_v20  ;;  %v2600_v12 = vrot.slane %v637_v54, %v2341_v20 }
  0x90   : > { %v1073_v23 = vpop.permute.xlu0 %1072  ;;  %v1096_v27 = vcombine.low %v1071_v8, %v1075_v21  ;;  %v1097_v28 = vcombine.high %v1071_v8, %v1075_v21  ;;  %v2606_v14 = vrot.slane %v960_v63, %v2341_v20  ;;  %v975_v15 = vcombine.high %v2581_v2, %v2262_v3 }
  0x91   : > { %v1080_v29 = vcombine.low %v1069_v10, %v1073_v23  ;;  %v1081_v30 = vcombine.high %v1069_v10, %v1073_v23  ;;  %v2159_v32 = vpack.i.bf16 %v805_v17, %v2542_v19  ;;  %v2164_v55 = vpack.i.bf16 %v2554_v6, %v2548_v33 }
  0x92   : > { %v1104_v35 = vrot.slane %v1096_v27, %v2327_v9  ;;  %v1111_v37 = vrot.slane %v1097_v28, %v2327_v9  ;;  %v2169_v61 = vpack.i.bf16 %v2575_v57, %v2569_v56  ;;  %v2611_v16 = vcombine.high %v805_v17, %v2262_v3 }
  0x93   : > { %v1088_v45 = vrot.slane %v1080_v29, %v2327_v9  ;;  %v1095_v39 = vrot.slane %v1081_v30, %v2327_v9  ;;  %2160 = vrot.lane.b32.xlu0 %v2159_v32, %s2266_s29  ;;  %v2561_v48 = vpop.permute.xlu1 %1586  ;;  %v822_v25 = vcombine.high %v2597_v62, %v2262_v3  ;;  %v669_v17 = vcombine.high %v2600_v12, %v2262_v3 }
  0x94   : > { %v2563_v50 = vpop.permute.xlu0 %1584  ;;  %v977_v29 = vcombine.high %v967_v60, %v2262_v3 }
  0x95   : > { %v1112_v51 = vcombine.low %v1088_v45, %v1104_v35  ;;  %v1113_v52 = vcombine.high %v1088_v45, %v1104_v35  ;;  %v1128_v7 = vcombine.low %v1095_v39, %v1111_v37  ;;  %v1129_v1 = vcombine.high %v1095_v39, %v1111_v37 }
  0x97   : > { %v1127_v58 = vrot.slane %v1113_v52, %v2341_v20  ;;  %2165 = vrot.lane.b32.xlu0 %v2164_v55, %s2268_s7  ;;  %v2583_v4 = vpop.permute.xlu1 %1590  ;;  %v2588_v10 = vrot.slane %v1112_v51, %v2341_v20  ;;  %v1136_v22 = vrot.slane %v1128_v7, %v2341_v20  ;;  %v2614_v21 = vrot.slane %v1129_v1, %v2341_v20 }
  0x98   : > { %v2585_v8 = vpop.permute.xlu0 %1588  ;;  %v670_v51 = vcombine.high %v2542_v19, %v2262_v3  ;;  %v1612_v52 = vcombine.low %v2561_v48, %v2583_v4 }
  0x99   : > { %v2174_v11 = vpack.i.bf16 %v1127_v58, %v958_v53  ;;  %v2179_v49 = vpack.i.bf16 %v1136_v22, %v967_v60  ;;  %v1144_v23 = vcombine.high %v2588_v10, %v2262_v3  ;;  %v2184_v37 = vpack.i.bf16 %v2614_v21, %v2606_v14 }
  0x9a   : > { %v1145_v39 = vcombine.high %v1127_v58, %v2262_v3  ;;  %v1596_v7 = vcombine.low %v2563_v50, %v2585_v8 }
  0x9b   : > { %2175 = vrot.lane.b32.xlu1 %v2174_v11, %s2266_s29  ;;  %2170 = vrot.lane.b32.xlu0 %v2169_v61, %s2270_s9  ;;  %v2111_v41 = vpop.permute.xlu1 %2110  ;;  %v2219_v45 = vpack.i.bf16 %v1144_v23, %v975_v15  ;;  %v824_v23 = vcombine.high %v2554_v6, %v2262_v3  ;;  %v671_v6 = vcombine.high %v2548_v33, %v2262_v3 }
  0x9c   : > { %v2106_v36 = vpop.permute.xlu0 %2105  ;;  %v2113_v27 = vunpack.i.h.bf16 %v2111_v41  ;;  %v2112_v28 = vunpack.i.l.bf16 %v2111_v41  ;;  %v2224_v15 = vpack.i.bf16 %v1145_v39, %v976_v13  ;;  %v1620_v13 = vrot.slane %v1612_v52, %v2327_v9 }
  0x9d   : > { %v2108_v24 = vunpack.i.h.bf16 %v2106_v36  ;;  %v2107_v26 = vunpack.i.l.bf16 %v2106_v36  ;;  %v1146_v36 = vcombine.high %v1136_v22, %v2262_v3  ;;  %v1604_v22 = vrot.slane %v1596_v7, %v2327_v9 }
  0x9e   : > { %v1613_v7 = vcombine.high %v2561_v48, %v2583_v4  ;;  %v1321_v4 = vcombine.high %v2505_v38, %v2262_v3 }
  0x9f   : > { %2180 = vrot.lane.b32.xlu1 %v2179_v49, %s2268_s7  ;;  %2215 = vrot.lane.b32.xlu0 %v2214_v43, %s2270_s9  ;;  %v374_v30 = vsel %vm373_vm2, %v2397_v59, %v2108_v24  ;;  %v485_v31 = vsel %vm373_vm2, %v2410_v5, %v2107_v26  ;;  %v2121_v35 = vpop.permute.xlu1 %2120  ;;  %v2189_v5 = vpack.i.bf16 %v822_v25, %v669_v17 }
  0xa0   : > { %v2116_v32 = vpop.permute.xlu0 %2115  ;;  %v376_v40 = vsel %vm375_vm3, %v374_v30, %v2113_v27  ;;  %v486_v43 = vsel %vm375_vm3, %v485_v31, %v2112_v28  ;;  %v2123_v54 = vunpack.i.h.bf16 %v2121_v35  ;;  %v2122_v58 = vunpack.i.l.bf16 %v2121_v35 }
  0xa1   : > { %v2118_v47 = vunpack.i.h.bf16 %v2116_v32  ;;  %v2117_v59 = vunpack.i.l.bf16 %v2116_v32  ;;  %v2194_v17 = vpack.i.bf16 %v2611_v16, %v670_v51  ;;  %v2229_v32 = vpack.i.bf16 %v1146_v36, %v977_v29 }
  0xa2   : > { %v978_v35 = vcombine.high %v2606_v14, %v2262_v3  ;;  %v1628_v16 = vcombine.low %v1604_v22, %v1620_v13  ;;  %v672_v29 = vcombine.high %v2569_v56, %v2262_v3  ;;  %v825_v14 = vcombine.high %v2575_v57, %v2262_v3 }
  0xa3   : > { %2185 = vrot.lane.b32.xlu1 %v2184_v37, %s2270_s9  ;;  %2220 = vrot.lane.b32.xlu0 %v2219_v45, %s2265_s28  ;;  %v378_v53 = vsel %vm377_vm4, %v376_v40, %v2118_v47  ;;  %v487_v55 = vsel %vm377_vm4, %v486_v43, %v2117_v59  ;;  %v2131_v63 = vpop.permute.xlu1 %2130  ;;  %v1147_v37 = vcombine.high %v2614_v21, %v2262_v3  ;;  %v1972_v59 = vld [vmem:[%s2906_s1 + $0x4] sm:$0xf] }
  0xa4   : > { %v2126_v60 = vpop.permute.xlu0 %2125  ;;  %v2133_v61 = vunpack.i.h.bf16 %v2131_v63  ;;  %v2132_v19 = vunpack.i.l.bf16 %v2131_v63  ;;  %v380_v41 = vsel %vm379_vm5, %v378_v53, %v2123_v54  ;;  %v488_v49 = vsel %vm379_vm5, %v487_v55, %v2122_v58 }
  0xa5   : > { %v2128_v1 = vunpack.i.h.bf16 %v2126_v60  ;;  %v2127_v11 = vunpack.i.l.bf16 %v2126_v60  ;;  %v2199_v43 = vpack.i.bf16 %v824_v23, %v671_v6  ;;  %v2234_v21 = vpack.i.bf16 %v1147_v37, %v978_v35 }
  0xa6   : > { %v1498_v56 = vcombine.high %v2508_v42, %v2262_v3  ;;  %v2684_v51 = vrot.slane %v1628_v16, %v2341_v20  ;;  %v2204_v52 = vpack.i.bf16 %v825_v14, %v672_v29  ;;  %v1597_v53 = vcombine.high %v2563_v50, %v2585_v8  ;;  %v388_v8 = vld [vmem:[%s2906_s1] sm:$0xf] }
  0xa7   : > { %2190 = vrot.lane.b32.xlu1 %v2189_v5, %s2265_s28  ;;  %v382_v24 = vsel %vm381_vm6, %v380_v41, %v2128_v1  ;;  %v489_v25 = vsel %vm381_vm6, %v488_v49, %v2127_v11  ;;  %2225 = vrot.lane.b32.xlu0 %v2224_v15, %s2267_s30  ;;  %v1629_v5 = vcombine.high %v1604_v22, %v1620_v13  ;;  %v2273_v60 = vmov 0   ;;  %v2141_v11 = vpop.permute.xlu1 %2140 }
  0xa8   : > { %v384_v26 = vsel %vm383_vm7, %v382_v24, %v2133_v61  ;;  %v2136_v27 = vpop.permute.xlu0 %2135  ;;  %v490_v28 = vsel %vm383_vm7, %v489_v25, %v2132_v19  ;;  %v1660_v42 = vcombine.high %v2684_v51, %v2262_v3  ;;  %v1627_v48 = vrot.slane %v1613_v7, %v2327_v9  ;;  %2239 = vset.pattern.permute.xlu0 %v2273_v60 }
  0xa9   : > { %v2138_v30 = vunpack.i.h.bf16 %v2136_v27  ;;  %v2137_v31 = vunpack.i.l.bf16 %v2136_v27  ;;  %v1643_v55 = vrot.slane %v1629_v5, %v2341_v20  ;;  %v1611_v50 = vrot.slane %v1597_v53, %v2327_v9  ;;  %2240 = vset.pattern.permute.xlu1 %v2273_v60 }
  0xaa   : > { %v2143_v24 = vunpack.i.h.bf16 %v2141_v11  ;;  %v2142_v25 = vunpack.i.l.bf16 %v2141_v11 }
  0xab   : > { %2195 = vrot.lane.b32.xlu1 %v2194_v17, %s2267_s30  ;;  %v491_v45 = vsel %vm385_vm8, %v490_v28, %v2137_v31  ;;  %v386_v39 = vsel %vm385_vm8, %v384_v26, %v2138_v30  ;;  %2230 = vrot.lane.b32.xlu0 %v2229_v32, %s2269_s8  ;;  %v1661_v54 = vcombine.high %v1643_v55, %v2262_v3  ;;  %v2735_v19 = vpop.permute.xlu1 %2150 }
  0xac   : > { %v492_v33 = vpack.c.bf16 %v491_v45, %v491_v45  ;;  %v387_v40 = vpack.c.bf16 %v386_v39, %v386_v39  ;;  %v1645_v58 = vcombine.high %v1611_v50, %v1627_v48  ;;  %v1644_v9 = vcombine.low %v1611_v50, %v1627_v48 }
  0xad   : > { %v1527_v6 = vsel %vm373_vm2, %v2488_v18, %v2143_v24  ;;  %v1350_v30 = vsel %vm373_vm2, %v2471_v0, %v2142_v25  ;;  %v2153_v31 = vunpack.i.h.bf16 %v2735_v19  ;;  %v2152_v32 = vunpack.i.l.bf16 %v2735_v19 }
  0xae   : > { %v501_v47 = vsel %vm499_vm9, %v492_v33, 0  ;;  %v547_v57 = vsel %vm499_vm9, %v387_v40, 0  ;;  %v1659_v38 = vrot.slane %v1645_v58, %v2341_v20  ;;  %v1652_v34 = vrot.slane %v1644_v9, %v2341_v20  ;;  %v2146_v20 = vpop.permute.xlu0 %2145 }
  0xaf   : > { %2200 = vrot.lane.b32.xlu1 %v2199_v43, %s2269_s8  ;;  %2024 = vmatpush3.bf16.msra.mxu1 %v501_v47  ;;  %v2148_v28 = vunpack.i.h.bf16 %v2146_v20  ;;  %v2147_v17 = vunpack.i.l.bf16 %v2146_v20 }
  0xb0   : > { %2235 = vrot.lane.b32.xlu0 %v2234_v21, %s2271_s10  ;;  %2029 = vmatprep.subr.bf16.mxu1 %v2262_v3  ;;  %v1662_v44 = vcombine.high %v1652_v34, %v2262_v3  ;;  %v1663_v63 = vcombine.high %v1659_v38, %v2262_v3 }
  0xb1   : > { %v1351_v0 = vsel %vm375_vm3, %v1350_v30, %v2147_v17  ;;  %v1528_v14 = vsel %vm375_vm3, %v1527_v6, %v2148_v28 }
  0xb2   : > { %2026 = vmatmul.mubr.msk.bf16.vlgmr.msra.gmra.mrb[0].mxu1 %vm495_vm10, %v1972_v59  ;;  %v2733_v1 = vpop.permute.xlu0 %2155  ;;  %v1352_v30 = vsel %vm377_vm4, %v1351_v0, %v2152_v32 }
  0xb3   : > { %2205 = vrot.lane.b32.xlu1 %v2204_v52, %s2271_s10  ;;  %2030 = vmatpush3.bf16.msra.mxu1 %v547_v57  ;;  %v2158_v58 = vunpack.i.h.bf16 %v2733_v1  ;;  %v2157_v9 = vunpack.i.l.bf16 %v2733_v1 }
  0xb4   : > { %1524 = vrot.lane.b32.xlu0 %v1498_v56, %s2271_s10  ;;  %2031 = vmatprep.mubr.msk.bf16.mxu1 %vm2272_vm1, %v2262_v3 }
  0xb5   : > { %2041 = vmatprep.subr.bf16.mxu1 %v2262_v3 }
  0xb7   : > { %2210 = vrot.lane.b32.xlu1 %v2209_v46, %s2269_s8  ;;  %v1749_v46 = vld [vmem:[%s2907_s2] sm:$0xff] }
  0xb8   : > { %1665 = vrot.lane.b32.xlu0 %v1660_v42, %s2265_s28 }
  0xba   : > { %2032 = vmatmul.mubr.msk.bf16.vlgmr.msra.gmra.mrb[4].mxu1 %vm495_vm10, %v388_v8 }
  0xbb   : > { %1347 = vrot.lane.b32.xlu1 %v1321_v4, %s2271_s10  ;;  %2043 = vmatprep.mubr.msk.bf16.mxu1 %vm2272_vm1, %v2262_v3 }
  0xbc   : > { %1673 = vrot.lane.b32.xlu0 %v1661_v54, %s2267_s30 }
  0xbf   : > { %1669 = vrot.lane.b32.xlu1 %v1643_v55, %s2266_s29 }
  0xc0   : > { %1685 = vrot.lane.b32.xlu0 %v1659_v38, %s2270_s9 }
  0xc3   : > { %1677 = vrot.lane.b32.xlu1 %v1652_v34, %s2268_s7  ;;  %s2002_s7 = sshll.u32 %s2913_s22, 4 }
  0xc4   : > { %1752 = vperm.xlu0 %2239, %v1749_v46  }
  0xc7   : > { %1681 = vrot.lane.b32.xlu1 %v1662_v44, %s2269_s8 }
  0xcb   : > { %1689 = vrot.lane.b32.xlu1 %v1663_v63, %s2271_s10  ;;  %s251_s10 = scalar_lea.vmem %s2911_s6, %s2002_s7 }
 0x105   : > { %v2161_v61 = vpop.permute.xlu0 %2160 }
 0x106   : > { %v2163_v47 = vunpack.i.h.bf16 %v2161_v61  ;;  %v2162_v59 = vunpack.i.l.bf16 %v2161_v61 }
 0x109   : > { %v2737_v15 = vpop.permute.xlu0 %2165 }
 0x10a   : > { %v2168_v38 = vunpack.i.h.bf16 %v2737_v15  ;;  %v2167_v34 = vunpack.i.l.bf16 %v2737_v15 }
 0x10d   : > { %v2176_v36 = vpop.permute.xlu1 %2175  ;;  %v2739_v41 = vpop.permute.xlu0 %2170 }
 0x10e   : > { %v2178_v40 = vunpack.i.h.bf16 %v2176_v36  ;;  %v2177_v43 = vunpack.i.l.bf16 %v2176_v36 }
 0x111   : > { %v2181_v49 = vpop.permute.xlu1 %2180  ;;  %v2741_v23 = vpop.permute.xlu0 %2215 }
 0x112   : > { %v2183_v50 = vunpack.i.h.bf16 %v2181_v49  ;;  %v2182_v4 = vunpack.i.l.bf16 %v2181_v49 }
 0x115   : > { %v2743_v13 = vpop.permute.xlu1 %2185  ;;  %v2221_v22 = vpop.permute.xlu0 %2220 }
 0x116   : > { %v2223_v26 = vunpack.i.h.bf16 %v2221_v22  ;;  %v2222_v27 = vunpack.i.l.bf16 %v2221_v22  ;;  %v2188_v28 = vunpack.i.h.bf16 %v2743_v13  ;;  %v2187_v17 = vunpack.i.l.bf16 %v2743_v13 }
 0x118   : > { %v1176_v37 = vsel %vm373_vm2, %v2588_v10, %v2223_v26  ;;  %v1007_v45 = vsel %vm373_vm2, %v2581_v2, %v2222_v27  ;;  %v2173_v26 = vunpack.i.h.bf16 %v2739_v41  ;;  %v2172_v27 = vunpack.i.l.bf16 %v2739_v41 }
 0x119   : > { %v2191_v35 = vpop.permute.xlu1 %2190  ;;  %v2226_v33 = vpop.permute.xlu0 %2225  ;;  %v1008_v2 = vsel %vm375_vm3, %v1007_v45, %v2177_v43  ;;  %v1177_v5 = vsel %vm375_vm3, %v1176_v37, %v2178_v40 }
 0x11a   : > { %v2193_v39 = vunpack.i.h.bf16 %v2191_v35  ;;  %v2192_v16 = vunpack.i.l.bf16 %v2191_v35  ;;  %v2228_v18 = vunpack.i.h.bf16 %v2226_v33  ;;  %v2227_v29 = vunpack.i.l.bf16 %v2226_v33 }
 0x11b   : > { %v1529_v35 = vsel %vm377_vm4, %v1528_v14, %v2153_v31  ;;  %v1353_v14 = vsel %vm379_vm5, %v1352_v30, %v2157_v9 }
 0x11c   : > { %v854_v21 = vsel %vm373_vm2, %v2597_v62, %v2193_v39  ;;  %v701_v10 = vsel %vm373_vm2, %v2600_v12, %v2192_v16  ;;  %v1009_v57 = vsel %vm377_vm4, %v1008_v2, %v2227_v29  ;;  %v1178_v52 = vsel %vm377_vm4, %v1177_v5, %v2228_v18 }
 0x11d   : > { %v2196_v56 = vpop.permute.xlu1 %2195  ;;  %v2231_v42 = vpop.permute.xlu0 %2230  ;;  %v702_v55 = vsel %vm375_vm3, %v701_v10, %v2162_v59  ;;  %v855_v62 = vsel %vm375_vm3, %v854_v21, %v2163_v47  ;;  %v1010_v46 = vsel %vm379_vm5, %v1009_v57, %v2182_v4  ;;  %v1179_v63 = vsel %vm379_vm5, %v1178_v52, %v2183_v50 }
 0x11e   : > { %v2198_v7 = vunpack.i.h.bf16 %v2196_v56  ;;  %v2197_v53 = vunpack.i.l.bf16 %v2196_v56  ;;  %v2233_v48 = vunpack.i.h.bf16 %v2231_v42  ;;  %v2232_v12 = vunpack.i.l.bf16 %v2231_v42  ;;  %v1975_v42 = vld [vmem:[%s2906_s1 + $0x8] sm:$0xf] }
 0x11f   : > { %v1530_v31 = vsel %vm379_vm5, %v1529_v35, %v2158_v58  ;;  %v2218_v21 = vunpack.i.h.bf16 %v2741_v23  ;;  %v2217_v10 = vunpack.i.l.bf16 %v2741_v23  ;;  %v1977_v23 = vld [vmem:[%s2906_s1 + $0xc] sm:$0xf] }
 0x120   : > { %v703_v8 = vsel %vm377_vm4, %v702_v55, %v2197_v53  ;;  %v856_v54 = vsel %vm377_vm4, %v855_v62, %v2198_v7  ;;  %v1011_v19 = vsel %vm381_vm6, %v1010_v46, %v2232_v12  ;;  %v1180_v36 = vsel %vm381_vm6, %v1179_v63, %v2233_v48  ;;  %v1981_v46 = vld [vmem:[%s2906_s1 + $0x14] sm:$0xf] }
 0x121   : > { %v2201_v44 = vpop.permute.xlu1 %2200  ;;  %v704_v49 = vsel %vm379_vm5, %v703_v8, %v2167_v34  ;;  %v857_v1 = vsel %vm379_vm5, %v856_v54, %v2168_v38  ;;  %v1012_v33 = vsel %vm383_vm7, %v1011_v19, %v2187_v17  ;;  %v1181_v40 = vsel %vm383_vm7, %v1180_v36, %v2188_v28 }
 0x122   : > { %v2203_v20 = vunpack.i.h.bf16 %v2201_v44  ;;  %v2202_v11 = vunpack.i.l.bf16 %v2201_v44  ;;  %v2236_v61 = vpop.permute.xlu0 %2235  ;;  %v1979_v44 = vld [vmem:[%s2906_s1 + $0x10] sm:$0xf] }
 0x123   : > { %v2238_v25 = vunpack.i.h.bf16 %v2236_v61  ;;  %v2237_v22 = vunpack.i.l.bf16 %v2236_v61 }
 0x124   : > { %v705_v24 = vsel %vm381_vm6, %v704_v49, %v2202_v11  ;;  %v858_v15 = vsel %vm381_vm6, %v857_v1, %v2203_v20 }
 0x125   : > { %v2206_v6 = vpop.permute.xlu1 %2205  ;;  %v706_v39 = vsel %vm383_vm7, %v705_v24, %v2172_v27  ;;  %v859_v16 = vsel %vm383_vm7, %v858_v15, %v2173_v26  ;;  %v1013_v13 = vsel %vm385_vm8, %v1012_v33, %v2237_v22  ;;  %v1182_v32 = vsel %vm385_vm8, %v1181_v40, %v2238_v25  ;;  %v1983_v15 = vld [vmem:[%s2906_s1 + $0x18] sm:$0xf]  ;;  %v1985_v25 = vld [vmem:[%s2906_s1 + $0x1c] sm:$0xf] }
 0x126   : > { %v2208_v37 = vunpack.i.h.bf16 %v2206_v6  ;;  %v2207_v45 = vunpack.i.l.bf16 %v2206_v6  ;;  %v1525_v47 = vpop.permute.xlu0 %1524  ;;  %v1014_v57 = vpack.c.bf16 %v1013_v13, %v1013_v13  ;;  %v1183_v52 = vpack.c.bf16 %v1182_v32, %v1182_v32  ;;  %v1987_v6 = vld [vmem:[%s2906_s1 + $0x20] sm:$0xf]  ;;  %v2246_v13 = vld [vmem:[%s2910_s5 + $0x14] ss:$8 sps:$4 sm:$0xff]   ;;  %v2244_v32 = vld [vmem:[%s2910_s5 + $0x10] ss:$8 sps:$4 sm:$0xff]  }
 0x128   : > { %v707_v41 = vsel %vm385_vm8, %v706_v39, %v2207_v45  ;;  %v860_v43 = vsel %vm385_vm8, %v859_v16, %v2208_v37  ;;  %v1021_v12 = vsel %vm499_vm9, %v1014_v57, 0  ;;  %v1190_v50 = vsel %vm499_vm9, %v1183_v52, 0 }
 0x129   : > { %v2211_v18 = vpop.permute.xlu1 %2210  ;;  %v708_v29 = vpack.c.bf16 %v707_v41, %v707_v41  ;;  %v861_v0 = vpack.c.bf16 %v860_v43, %v860_v43  ;;  %v1759_v41 = vld [vmem:[%s2909_s4] sm:$0x3f] }
 0x12a   : > { %v2213_v59 = vunpack.i.h.bf16 %v2211_v18  ;;  %v2212_v2 = vunpack.i.l.bf16 %v2211_v18  ;;  %v1666_v4 = vpop.permute.xlu0 %1665  ;;  %v2241_v43 = vld [vmem:[%s2910_s5] ss:$8 sps:$4 sm:$0xff]   ;;  %1762 = vperm.xlu1 %2240, %v1759_v41   ;;  %v2249_v18 = vld [vmem:[%s2910_s5 + $0x24] ss:$8 sps:$4 sm:$0xff]  }
 0x12b   : > { %v715_v5 = vsel %vm499_vm9, %v708_v29, 0  ;;  %v868_v56 = vsel %vm499_vm9, %v861_v0, 0  ;;  %v1692_v34 = vsel %vm373_vm2, %v2684_v51, %v1666_v4 }
 0x12c   : > { %v1531_v7 = vsel %vm381_vm6, %v1530_v31, %v2213_v59  ;;  %2036 = vmatpush3.bf16.msra.mxu0 %v715_v5  ;;  %2042 = vmatpush3.bf16.msra.mxu1 %v868_v56  ;;  %v1354_v53 = vsel %vm381_vm6, %v1353_v14, %v2212_v2  ;;  %v2247_v31 = vld [vmem:[%s2910_s5 + $0x20] ss:$8 sps:$4 sm:$0xff]  }
 0x12d   : > { %v1348_v55 = vpop.permute.xlu1 %1347  ;;  %v1355_v62 = vsel %vm383_vm7, %v1354_v53, %v2217_v10  ;;  %2047 = vmatprep.subr.bf16.mxu0 %v2262_v3  ;;  %2053 = vmatprep.subr.bf16.mxu1 %v2262_v3  ;;  %v1532_v48 = vsel %vm383_vm7, %v1531_v7, %v2218_v21 }
 0x12e   : > { %v1356_v8 = vsel %vm385_vm8, %v1355_v62, %v1348_v55  ;;  %v1533_v54 = vsel %vm385_vm8, %v1532_v48, %v1525_v47  ;;  %v1674_v11 = vpop.permute.xlu0 %1673 }
 0x12f   : > { %2038 = vmatmul.mubr.msk.bf16.vlgmr.msra.gmra.mrb[0].mxu0 %vm495_vm10, %v1975_v42  ;;  %2044 = vmatmul.mubr.msk.bf16.vlgmr.msra.gmra.mrb[8].mxu1 %vm495_vm10, %v1977_v23  ;;  %v1357_v9 = vpack.c.bf16 %v1356_v8, %v1356_v8  ;;  %v1534_v38 = vpack.c.bf16 %v1533_v54, %v1533_v54 }
 0x130   : > { %2048 = vmatpush3.bf16.msra.mxu0 %v1021_v12  ;;  %2054 = vmatpush3.bf16.msra.mxu1 %v1190_v50 }
 0x131   : > { %v1670_v58 = vpop.permute.xlu1 %1669  ;;  %2049 = vmatprep.mubr.msk.bf16.mxu0 %vm2272_vm1, %v2262_v3  ;;  %2055 = vmatprep.mubr.msk.bf16.mxu1 %vm2272_vm1, %v2262_v3  ;;  %v1364_v61 = vsel %vm499_vm9, %v1357_v9, 0  ;;  %v1541_v51 = vsel %vm499_vm9, %v1534_v38, 0 }
 0x132   : > { %2059 = vmatprep.subr.bf16.mxu0 %v2262_v3  ;;  %2065 = vmatprep.subr.bf16.mxu1 %v2262_v3  ;;  %v1693_v63 = vsel %vm375_vm3, %v1692_v34, %v1670_v58  ;;  %v1686_v24 = vpop.permute.xlu0 %1685 }
 0x133   : > { %v1694_v19 = vsel %vm377_vm4, %v1693_v63, %v1674_v11 }
 0x135   : > { %v1678_v20 = vpop.permute.xlu1 %1677 }
 0x136   : > { %v1695_v36 = vsel %vm379_vm5, %v1694_v19, %v1678_v20 }
 0x137   : > { %2050 = vmatmul.mubr.msk.bf16.vlgmr.msra.gmra.mrb[4].mxu0 %vm495_vm10, %v1979_v44  ;;  %2056 = vmatmul.mubr.msk.bf16.vlgmr.msra.gmra.mrb[12].mxu1 %vm495_vm10, %v1981_v46 }
 0x138   : > { %2060 = vmatpush3.bf16.msra.mxu0 %v1364_v61  ;;  %2066 = vmatpush3.bf16.msra.mxu1 %v1541_v51 }
 0x139   : > { %v1682_v49 = vpop.permute.xlu1 %1681  ;;  %2061 = vmatprep.mubr.msk.bf16.mxu0 %vm2272_vm1, %v2262_v3  ;;  %2067 = vmatprep.mubr.msk.bf16.mxu1 %vm2272_vm1, %v2262_v3 }
 0x13a   : > { %v1696_v1 = vsel %vm381_vm6, %v1695_v36, %v1682_v49  ;;  %2071 = vmatprep.subr.bf16.mxu0 %v2262_v3  ;;  %2077 = vmatprep.subr.bf16.mxu1 %v2262_v3 }
 0x13b   : > { %v1697_v26 = vsel %vm383_vm7, %v1696_v1, %v1686_v24 }
 0x13d   : > { %v1690_v22 = vpop.permute.xlu1 %1689 }
 0x13e   : > { %v1698_v27 = vsel %vm385_vm8, %v1697_v26, %v1690_v22  ;;  %v2250_v22 = vld [vmem:[%s2910_s5 + $0x30] ss:$8 sps:$4 sm:$0xff]  }
 0x13f   : > { %v1699_v28 = vpack.c.bf16 %v1698_v27, %v1698_v27  ;;  %2062 = vmatmul.mubr.msk.bf16.vlgmr.msra.gmra.mrb[8].mxu0 %vm495_vm10, %v1983_v15  ;;  %2068 = vmatmul.mubr.msk.bf16.vlgmr.msra.gmra.mrb[16].mxu1 %vm495_vm10, %v1985_v25  ;;  %v1757_v15 = vld [vmem:[%s2908_s3] sm:$0x7]  ;;  %v2252_v25 = vld [vmem:[%s2910_s5 + $0x34] ss:$8 sps:$4 sm:$0xff]  }
 0x140   : > { %2073 = vmatprep.mubr.msk.bf16.mxu0 %vm2272_vm1, %v2262_v3  ;;  %2079 = vmatprep.mubr.msk.bf16.mxu1 %vm2272_vm1, %v2262_v3 }
 0x141   : > { %v1706_v17 = vsel %vm499_vm9, %v1699_v28, 0 }
 0x142   : > { %2072 = vmatpush3.bf16.msra.mxu0 %v1706_v17 }
 0x143   : > { %v1753_v20 = vpop.permute.xlu0 %1752 }
 0x147   : > { %2074 = vmatmul.mubr.msk.bf16.vlgmr.msra.gmra.mrb[12].mxu0 %vm495_vm10, %v1987_v6 }
 0x148   : > { %1897 = vmatprep.mubr.bf16.mxu0 %v2273_v60  ;;  %v2243_v60 = vld [vmem:[%s2910_s5 + $0x4] ss:$8 sps:$4 sm:$0xff]  }
 0x149   : > { %1865 = vmatprep.subr.bf16.mxu0 %v2243_v60 }
 0x14a   : > { %1866 = vmatpush1.bf16.msra.mxu0 %v2241_v43 }
 0x14b   : > { %1867 = vmatprep.subr.bf16.mxu0 %v2246_v13 }
 0x14e   : > { %1868 = vmatpush1.bf16.msra.mxu0 %v2244_v32 }
 0x14f   : > { %1869 = vmatprep.subr.bf16.mxu0 %v2249_v18 }
 0x152   : > { %1870 = vmatpush1.bf16.msra.mxu0 %v2247_v31 }
 0x153   : > { %1871 = vmatprep.subr.bf16.mxu0 %v2252_v25 }
 0x156   : > { %1872 = vmatpush1.bf16.msra.mxu0 %v2250_v22 }
 0x185   : > { %v537_v30 = vpop.f32.mrb[0].mxu1 }
 0x186   : > { %v2027_v35 = vpop.f32.mrb[1].mxu1 }
 0x187   : > { %v540_v37 = vpop.f32.mrb[2].mxu1 }
 0x188   : > { %v2028_v45 = vpop.f32.mrb[3].mxu1 }
 0x18d   : > { %v583_v39 = vpop.f32.mrb[4].mxu1 }
 0x18e   : > { %v584_v16 = vadd.f32 %v583_v39, %v537_v30  ;;  %v2033_v33 = vpop.f32.mrb[5].mxu1 }
 0x18f   : > { %v586_v40 = vpop.f32.mrb[6].mxu1 }
 0x190   : > { %v2034_v3 = vpop.f32.mrb[7].mxu1 }
 0x1a9   : > { %v1763_v26 = vpop.permute.xlu1 %1762 }
 0x202   : > { %v751_v29 = vpop.f32.mrb[0].mxu0  ;;  %v904_v0 = vpop.f32.mrb[8].mxu1 }
 0x203   : > { %v757_v14 = vadd.f32 %v751_v29, %v584_v16  ;;  %v2039_v21 = vpop.f32.mrb[1].mxu0  ;;  %v2045_v10 = vpop.f32.mrb[9].mxu1 }
 0x204   : > { %v754_v47 = vpop.f32.mrb[2].mxu0  ;;  %v907_v59 = vpop.f32.mrb[10].mxu1 }
 0x205   : > { %v910_v2 = vadd.f32 %v904_v0, %v757_v14  ;;  %v2040_v5 = vpop.f32.mrb[3].mxu0  ;;  %v2046_v56 = vpop.f32.mrb[11].mxu1 }
 0x20a   : > { %v1057_v57 = vpop.f32.mrb[4].mxu0  ;;  %v1226_v52 = vpop.f32.mrb[12].mxu1 }
 0x20b   : > { %v1063_v7 = vadd.f32 %v1057_v57, %v910_v2  ;;  %v2051_v53 = vpop.f32.mrb[5].mxu0  ;;  %v2057_v42 = vpop.f32.mrb[13].mxu1 }
 0x20c   : > { %v1060_v23 = vpop.f32.mrb[6].mxu0  ;;  %v1229_v55 = vpop.f32.mrb[14].mxu1 }
 0x20d   : > { %v1232_v62 = vadd.f32 %v1226_v52, %v1063_v7  ;;  %v2052_v48 = vpop.f32.mrb[7].mxu0  ;;  %v2058_v12 = vpop.f32.mrb[15].mxu1 }
 0x212   : > { %v1400_v50 = vpop.f32.mrb[8].mxu0  ;;  %v1577_v4 = vpop.f32.mrb[16].mxu1 }
 0x213   : > { %v1406_v8 = vadd.f32 %v1400_v50, %v1232_v62  ;;  %v2063_v54 = vpop.f32.mrb[9].mxu0  ;;  %v2069_v58 = vpop.f32.mrb[17].mxu1 }
 0x214   : > { %v1403_v9 = vpop.f32.mrb[10].mxu0  ;;  %v1580_v38 = vpop.f32.mrb[18].mxu1 }
 0x215   : > { %v1583_v34 = vadd.f32 %v1577_v4, %v1406_v8  ;;  %v2064_v44 = vpop.f32.mrb[11].mxu0  ;;  %v2070_v46 = vpop.f32.mrb[19].mxu1 }
 0x21a   : > { %v1742_v63 = vpop.f32.mrb[12].mxu0 }
 0x21b   : > { %v1748_v11 = vadd.f32 %v1742_v63, %v1583_v34  ;;  %v2075_v61 = vpop.f32.mrb[13].mxu0 }
 0x21c   : > { %v1745_v51 = vpop.f32.mrb[14].mxu0 }
 0x21d   : > { %v1755_v19 = vadd.f32 %v1753_v20, %v1748_v11  ;;  %v2076_v36 = vpop.f32.mrb[15].mxu0 }
 0x21f   : > { %v1756_v49 = vmax.f32 %v1755_v19, 0.0 }
 0x221   : > { %v1758_v1 = vpack.c.bf16 %v1756_v49, %v1756_v49 }
 0x223   : > { %v1770_v24 = vsel %vm1768_vm11, %v1758_v1, 0 }
 0x224   : > { %2078 = vmatpush3.bf16.msra.mxu1 %v1770_v24 }
 0x227   : > { %2080 = vmatmul.mubr.msk.bf16.vlgmr.msra.gmra.mrb[20].mxu1 %vm373_vm2, %v1757_v15 }
 0x2fa   : > { %v1806_v27 = vpop.f32.mrb[20].mxu1 }
 0x2fb   : > { %v1807_v28 = vadd.f32 %v1806_v27, %v1763_v26  ;;  %v2081_v17 = vpop.f32.mrb[21].mxu1 }
 0x2fc   : > { %v1809_v6 = vpop.f32.mrb[22].mxu1 }
 0x2fd   : > { %v1812_v30 = vpack.c.bf16 %v1807_v28, %v1807_v28  ;;  %v2082_v35 = vpop.f32.mrb[23].mxu1 }
 0x2ff   : > { %1998 = vmatmul.mubr.msk.bf16.vlgmr.msra.gmra.mrb[16].mxu0 %vm1861_vm12, %v1812_v30 }
 0x3d2   : > { %v1899_v37 = vpop.f32.mrb[16].mxu0 }
 0x3d3   : > { %1906 = vst [vmem:[%s251_s10] sm:$0x3f] %v1899_v37  ;;  %v1901_v45 = vpop.f32.mrb[17].mxu0 }
 0x3d4   : > { %1907 = vst [vmem:[%s251_s10 + $0x8] sm:$0x3f] %v1901_v45  ;;  %v1903_v39 = vpop.f32.mrb[18].mxu0 }
 0x3d5   : > { %v1904_v16 = vpop.f32.mrb[19].mxu0 }
 0x3d6 PF: > { %s16_s21 = sadd.s32 1, %s2259_s21  }
 0x3d7   : > { %p13_p4 = scmp.ge.s32.totalorder %s16_s21, 4  }
 0x3d9   :  { %15 = sbr.rel (!%p13_p4) target bundleno = 1 (0x1), region = 82 }

</bundles_post_ra>
